<compile_context>
chip_gen: v7x
topology: tpu7x:2x2x1
jax: 0.10.0
libtpu: 0.0.40
codegen_flags: <defaults>
</compile_context>

<pallas_src>
import functools
import math

import jax
import jax.numpy as jnp
from jax.experimental import pallas as pl
from jax.experimental.pallas import tpu as pltpu


# ----------------------------------------------------------------------------
# Parameter setup (matches torch __init__): pe[:, 0::2]=sin, pe[:, 1::2]=cos
# ----------------------------------------------------------------------------
def make_positional_encoding(d_model: int, max_len: int = 90) -> jnp.ndarray:
    position = jnp.arange(max_len, dtype=jnp.float32)[:, None]              # (L, 1)
    div_term = jnp.exp(
        jnp.arange(0, d_model, 2, dtype=jnp.float32) * (-math.log(10000.0) / d_model)
    )                                                                        # (D/2,)
    pe = jnp.zeros((max_len, d_model), jnp.float32)
    pe = pe.at[:, 0::2].set(jnp.sin(position * div_term))
    pe = pe.at[:, 1::2].set(jnp.cos(position * div_term))
    # torch: pe.unsqueeze(0).transpose(0, 1) -> (max_len, 1, d_model)
    return pe[:, None, :]


# ----------------------------------------------------------------------------
# Stateless uint32 mixer (lowbias32-style finalizer): pure VPU integer ops.
# ----------------------------------------------------------------------------
def _mix32(h):
    h = h ^ (h >> 16)
    h = h * jnp.uint32(0x7FEB352D)
    h = h ^ (h >> 15)
    h = h * jnp.uint32(0x846CA68B)
    h = h ^ (h >> 16)
    return h


# ----------------------------------------------------------------------------
# Pallas kernel: y = x + pe ; optionally inverted dropout (training)
# ----------------------------------------------------------------------------
def _pe_dropout_kernel(seed_ref, x_ref, pe_ref, o_ref, *, ts: int, bd: int,
                       p: float, training: bool, pe_resident: bool):
    # x_ref: (TS, B*D) lane-dense tile of x for seq block i = program_id(0)
    # pe_ref: whole (S_pad, B*D) table (resident) or the matching (TS, B*D) tile
    i = pl.program_id(0)
    if pe_resident:
        off = pl.multiple_of(i * ts, ts)       # ts is sublane-aligned (or == S)
        pe_tile = pe_ref[pl.ds(off, ts), :]
    else:
        pe_tile = pe_ref[...]

    # Broadcast-across-batch already baked into the table; add in x's dtype.
    y = x_ref[...] + pe_tile

    if training and p > 0.0:
        if p >= 1.0:
            y = jnp.zeros_like(y)
        else:
            # Counter-based PRNG: bits = mix(global_index, seed).  Independent
            # of tiling; decorrelated across blocks and consecutive seeds.
            row = jax.lax.broadcasted_iota(jnp.uint32, (ts, bd), 0)
            col = jax.lax.broadcasted_iota(jnp.uint32, (ts, bd), 1)
            base = jnp.asarray(i * ts, dtype=jnp.uint32)
            gidx = (row + base) * jnp.uint32(bd) + col
            seed_u = seed_ref[0].astype(jnp.uint32)
            h = _mix32(gidx * jnp.uint32(0x9E3779B1) + seed_u * jnp.uint32(0x85EBCA77))
            # drop iff bits < p * 2^32  =>  keep prob = 1 - p
            thresh = jnp.uint32(min(int(round(p * 4294967296.0)), 4294967295))
            keep = h >= thresh
            scale = jnp.asarray(1.0 / (1.0 - p), dtype=y.dtype)
            y = jnp.where(keep, y * scale, jnp.zeros_like(y))

    o_ref[...] = y.astype(o_ref.dtype)


# ----------------------------------------------------------------------------
# Wrapper
# ----------------------------------------------------------------------------
@functools.partial(jax.jit, static_argnames=("p", "training"))
def positional_encoding_forward(x, pe, seed, *, p: float = 0.1, training: bool = False):
    """x: (S, B, D); pe: (max_len, 1, D); seed: (1,) int32."""
    S, B, D = x.shape
    if S > pe.shape[0]:
        raise ValueError(f"seq_len {S} exceeds max_len {pe.shape[0]}")

    BD = B * D
    itemsize = x.dtype.itemsize
    sub = max(8, 32 // itemsize)            # sublane granularity: 8 f32, 16 bf16

    # Lane-dense 2D view: (B, D) collapsed onto the lane axis (free reshape).
    x2 = x.reshape(S, BD)

    # Tile sizing: ~4 MiB of x per block (amortizes ~0.35us/step grid overhead;
    # double-buffered x + out ~= 16 MiB, covered by explicit vmem_limit_bytes).
    row_bytes = BD * itemsize
    ts = max(1, (4 * 1024 * 1024) // max(1, row_bytes))
    ts = min(ts, S)
    # v7x megacore: make sure there are >= 2 independent blocks when S allows.
    if ts >= S and S >= 2 * sub:
        ts = -(-S // 2)
    # Align to sublane granularity (or keep ts == S for tiny sequences).
    if ts < S:
        ts = max(sub, (ts // sub) * sub)
    num_blocks = -(-S // ts)
    s_pad = num_blocks * ts

    # PE table: squeeze to 2D, pre-cast to x.dtype, replicate across batch along
    # lanes (matches the (S, B*D) row layout), pad so in-kernel pl.ds is in-bounds.
    pe2 = pe[:S, 0, :].astype(x.dtype)                 # (S, D)
    pe2 = jnp.tile(pe2, (1, B))                        # (S, B*D)
    if s_pad != S:
        pe2 = jnp.pad(pe2, ((0, s_pad - S), (0, 0)))

    # Keep the whole table VMEM-resident (DMA'd once) when small; otherwise
    # stream matching (ts, B*D) tiles per grid step.
    pe_resident = (s_pad * BD * itemsize) <= (4 * 1024 * 1024)
    if pe_resident:
        pe_spec = pl.BlockSpec((s_pad, BD), lambda i, seed_ref: (0, 0))
    else:
        pe_spec = pl.BlockSpec((ts, BD), lambda i, seed_ref: (i, 0))

    kernel = functools.partial(_pe_dropout_kernel, ts=ts, bd=BD, p=p,
                               training=training, pe_resident=pe_resident)

    grid_spec = pltpu.PrefetchScalarGridSpec(
        num_scalar_prefetch=1,                         # seed lives in SMEM
        grid=(num_blocks,),
        in_specs=[
            pl.BlockSpec((ts, BD), lambda i, seed_ref: (i, 0)),   # x tile
            pe_spec,                                              # pe table
        ],
        out_specs=pl.BlockSpec((ts, BD), lambda i, seed_ref: (i, 0)),
    )

    # NOTE: x could be aliased to the output (input_output_aliases={1: 0}) when
    # the caller does not need x afterwards; left off here since the demo does.
    out2 = pl.pallas_call(
        kernel,
        out_shape=jax.ShapeDtypeStruct((S, BD), x.dtype),
        grid_spec=grid_spec,
        compiler_params=pltpu.CompilerParams(
            dimension_semantics=("parallel",),         # blocks independent
            vmem_limit_bytes=48 * 1024 * 1024,         # covers v5e 16 MiB default
        ),
    )(seed, x2, pe2)

    return out2.reshape(S, B, D)


# ----------------------------------------------------------------------------
if __name__ == "__main__":
    d_model = 32
    max_len = 90
    seq_len = 8
    batch = 2

    key = jax.random.PRNGKey(0)
    x = jax.random.normal(key, (seq_len, batch, d_model), dtype=jnp.float32)
    pe = make_positional_encoding(d_model, max_len)
    seed = jnp.array([0], dtype=jnp.int32)

    # Eval-mode forward (dropout is identity), as in module.eval().
    out = positional_encoding_forward(x, pe, seed, p=0.1, training=False)
    out = jax.block_until_ready(out)

    ref = x + pe[:seq_len]
    assert out.shape == (seq_len, batch, d_model)
    assert jnp.allclose(out, ref, atol=1e-6, rtol=1e-6), "mismatch vs reference"

    # Training-mode forward (exercises the in-kernel dropout path).
    out_tr = positional_encoding_forward(x, pe, seed, p=0.1, training=True)
    out_tr = jax.block_until_ready(out_tr)
    assert out_tr.shape == (seq_len, batch, d_model)

    zero_frac = float(jnp.mean((out_tr == 0).astype(jnp.float32)))
    assert 0.0 < zero_frac < 0.5, f"implausible dropout zero fraction {zero_frac}"
    # Kept elements must equal (x + pe) * 1/(1-p).
    expected_kept = ref * jnp.float32(1.0 / 0.9)
    ok = jnp.where(out_tr != 0,
                   jnp.abs(out_tr - expected_kept)
                   <= 1e-5 * (1.0 + jnp.abs(expected_kept)),
                   True)
    assert bool(jnp.all(ok)), "kept dropout elements not scaled correctly"

    print("KERNEL_OK")
</pallas_src>

<mosaic_0001>
module attributes {stable_mosaic.version = 11 : i64} {
  func.func @_pe_dropout_kernel(%arg0: i32, %arg1: memref<1xi32, #tpu.memory_space<smem>>, %arg2: memref<8x64xf32, #tpu.memory_space<vmem>>, %arg3: memref<8x64xf32, #tpu.memory_space<vmem>>, %arg4: memref<8x64xf32, #tpu.memory_space<vmem>>) attributes {dimension_semantics = [#tpu.dimension_semantics<parallel>], iteration_bounds = array<i64: 1>, scalar_prefetch = 1 : i64, scratch_operands = 0 : i64, tpu.core_type = #tpu.core_type<tc>, window_params = [{transform_indices = @transform_0, window_bounds = array<i64: 8, 64>}, {pipeline_mode = #tpu.pipeline_mode<synchronous>, transform_indices = @transform_1, window_bounds = array<i64: 8, 64>}, {transform_indices = @transform_2, window_bounds = array<i64: 8, 64>}]} {
    %c8_i32 = arith.constant 8 : i32
    %0 = arith.muli %arg0, %c8_i32 : i32
    %1 = tpu.assume_multiple %0, 8 : i32
    %2 = arith.index_cast %1 : i32 to index
    %c0 = arith.constant 0 : index
    %3 = vector.load %arg3[%2, %c0] : memref<8x64xf32, #tpu.memory_space<vmem>>, vector<8x64xf32>
    %c0_0 = arith.constant 0 : index
    %c0_1 = arith.constant 0 : index
    %4 = vector.load %arg2[%c0_0, %c0_1] : memref<8x64xf32, #tpu.memory_space<vmem>>, vector<8x64xf32>
    %5 = arith.addf %4, %3 : vector<8x64xf32>
    %c0_2 = arith.constant 0 : index
    %c0_3 = arith.constant 0 : index
    %6 = vector.load %arg4[%c0_2, %c0_3] : memref<8x64xf32, #tpu.memory_space<vmem>>, vector<8x64xf32>
    tpu.vector_store %arg4[%c0_2, %c0_3], %5 {strides = array<i32>} : memref<8x64xf32, #tpu.memory_space<vmem>>, vector<8x64xf32>,
    return
  }
  func.func @transform_0(%arg0: i32, %arg1: memref<1xi32, #tpu.memory_space<smem>>) -> (i32, i32) {
    %c0_i32 = arith.constant 0 : i32
    %c0_i32_0 = arith.constant 0 : i32
    return %arg0, %c0_i32 : i32, i32
  }
  func.func @transform_1(%arg0: i32, %arg1: memref<1xi32, #tpu.memory_space<smem>>) -> (i32, i32) {
    %c0_i32 = arith.constant 0 : i32
    %c0_i32_0 = arith.constant 0 : i32
    %c0_i32_1 = arith.constant 0 : i32
    return %c0_i32, %c0_i32_0 : i32, i32
  }
  func.func @transform_2(%arg0: i32, %arg1: memref<1xi32, #tpu.memory_space<smem>>) -> (i32, i32) {
    %c0_i32 = arith.constant 0 : i32
    %c0_i32_0 = arith.constant 0 : i32
    return %arg0, %c0_i32 : i32, i32
  }
}

</mosaic_0001>

<bundles_post_ra>
// kernel: tile.7
= control target key start
LH: loop header
LB: loop body
LE: loop exit
PB: predicated region body
PF: predicated region fallthrough
CT: control target
= control target key end

     0   :  { %vm42_vm0 = vcmask 1047556   ;;  %vm44_vm1 = vcmask 261120   ;;  %vm54_vm2 = vcmask 523520   ;;  %s111_s0 = inlined_call_operand.vmem [shape: f32[8,2,32], index: 0, kind: input, shape index: {}]   ;;  %s112_s1 = inlined_call_operand.vmem [shape: f32[8,64], index: 1, kind: output, shape index: {}]  }
   0x1   :  { %v62_v0 = vld [vmem:[%s111_s0 + $0xe] sm:$0x3]  ;;  %v63_v1 = vld [vmem:[%s111_s0 + $0xc] sm:$0x3]  ;;  %v64_v2 = vld [vmem:[%s111_s0 + $0xa] sm:$0x3] }
   0x2   :  { %8 = vst [vmem:[#allocation0 + $0x38] sm:$0x3] %v62_v0  ;;  %13 = vst [vmem:[#allocation0 + $0x30] sm:$0x3] %v63_v1  ;;  %v65_v3 = vld [vmem:[%s111_s0 + $0x8] sm:$0x3] }
   0x3   :  { %18 = vst [vmem:[#allocation0 + $0x28] sm:$0x3] %v64_v2  ;;  %v66_v4 = vld [vmem:[%s111_s0 + $0x6] sm:$0x3]  ;;  %v67_v5 = vld [vmem:[%s111_s0 + $0x4] sm:$0x3] }
   0x4   :  { %23 = vst [vmem:[#allocation0 + $0x20] sm:$0x3] %v65_v3  ;;  %28 = vst [vmem:[#allocation0 + $0x18] sm:$0x3] %v66_v4  ;;  %v68_v6 = vld [vmem:[%s111_s0 + $0x2] sm:$0x3] }
   0x5   :  { %33 = vst [vmem:[#allocation0 + $0x10] sm:$0x3] %v67_v5  ;;  %v38_v7 = vld [vmem:[%s111_s0] sm:$0x3]  ;;  %37 = vst [vmem:[#allocation0 + $0x8] sm:$0x3] %v68_v6 }
   0x6   :  { %39 = vst [vmem:[#allocation0] sm:$0x3] %v38_v7  ;;  %s70_s0 = smov 32  }
   0xb   :  { %v41_v8 = vld [vmem:[#allocation0] ss:$8 sm:$0xf0]   ;;  %v49_v9 = vld [vmem:[#allocation0 + $0x1] ss:$8 sm:$0xf0]  }
   0xd   :  { %v40_v10 = vld [vmem:[#allocation0] ss:$8 sm:$0xf]   ;;  %v47_v11 = vld [vmem:[#allocation0 + $0x1] ss:$8 sm:$0xf]  }
   0xe   :  { %v43_v12 = vsel %vm42_vm0, %v41_v8, %v40_v10  ;;  %v51_v13 = vsel %vm42_vm0, %v49_v9, %v47_v11 }
   0xf   :  { %52 = vrot.lane.b32.xlu0 %v51_v13, %s70_s0  ;;  %45 = vst.msk [vmem:[%s112_s1] sm:$0xff] %vm44_vm1, %v43_v12  }
  0x81   :  { %v53_v14 = vpop.permute.xlu0 %52  }
  0x82   :  { %55 = vst.msk [vmem:[%s112_s1] sm:$0xff] %vm54_vm2, %v53_v14  }

// kernel: positional_encoding_forward.1
= control target key start
LH: loop header
LB: loop body
LE: loop exit
PB: predicated region body
PF: predicated region fallthrough
CT: control target
= control target key end

     0   :  { %vm18_vm0 = vcmask 523264   ;;  %s53_s0 = inlined_call_operand.<no memory space> [shape: s32[1], index: 0, kind: input, shape index: {}]   ;;  %s54_s1 = inlined_call_operand.vmem [shape: f32[8,64], index: 1, kind: input, shape index: {}]   ;;  %s55_s2 = inlined_call_operand.vmem [shape: f32[8,64], index: 2, kind: input, shape index: {}]   ;;  %s56_s3 = inlined_call_operand.vmem [shape: f32[8,64], index: 3, kind: output, shape index: {}]  }
   0x1   :  { %v15_v0 = vld [vmem:[%s55_s2] sm:$0xff] }
   0x2   :  { %v16_v1 = vld [vmem:[%s54_s1] sm:$0xff] }
   0x3   :  { %v17_v2 = vadd.f32 %v16_v1, %v15_v0 }
   0x5   :  { %19 = vst.msk [vmem:[%s56_s3] sm:$0xff] %vm18_vm0, %v17_v2 }

</bundles_post_ra>
